<compile_context>
chip_gen: v6e
topology: v6e:2x2x1
jax: 0.10.0
libtpu: 0.0.40
codegen_flags: <defaults>
</compile_context>

<pallas_src>
import functools

import jax
import jax.numpy as jnp
from jax.experimental import pallas as pl
from jax.experimental.pallas import tpu as pltpu


# ----------------------------------------------------------------------------
# Pallas kernel: tiled matmul with K-reduction grid + fused bias/activation.
# ----------------------------------------------------------------------------
def _matmul_bias_act_kernel(x_ref, w_ref, b_ref, o_ref, acc_ref, *, act):
    k = pl.program_id(2)

    @pl.when(k == 0)
    def _():
        acc_ref[...] = jnp.zeros_like(acc_ref)

    acc_ref[...] += jnp.dot(
        x_ref[...], w_ref[...], preferred_element_type=jnp.float32)

    @pl.when(k == pl.num_programs(2) - 1)
    def _():
        y = acc_ref[...] + b_ref[...].astype(jnp.float32)
        if act == "lrelu":
            y = jnp.where(y >= 0, y, 0.01 * y)
        elif act == "sigmoid":
            y = 1.0 / (1.0 + jnp.exp(-y))
        elif act == "softmax":
            z = y - jnp.max(y, axis=-1, keepdims=True)
            e = jnp.exp(z)
            y = e / jnp.sum(e, axis=-1, keepdims=True)
        o_ref[...] = y.astype(o_ref.dtype)


def _pick_tile(dim, candidates):
    for c in candidates:
        if c <= dim and dim % c == 0:
            return c
    return dim


def matmul_bias_act(x, w, b, *, act="none"):
    """y = act(x @ w + b).  x: (M, K), w: (K, N), b: (N,), all float32."""
    m, k = x.shape
    k2, n = w.shape
    assert k == k2 and b.shape == (n,)

    tm = _pick_tile(m, (256, 128, 64, 32, 16, 8))
    tn = _pick_tile(n, (256, 128))
    tk = _pick_tile(k, (2048, 1600, 1280, 1024, 640, 512, 256, 128))
    if act == "softmax":
        # softmax is row-wise; the epilogue needs the full output row in-block.
        assert tn == n, "softmax epilogue requires tn == N"

    b2 = b.reshape(1, n)
    grid = (m // tm, n // tn, k // tk)
    kernel = functools.partial(_matmul_bias_act_kernel, act=act)

    return pl.pallas_call(
        kernel,
        out_shape=jax.ShapeDtypeStruct((m, n), x.dtype),
        grid=grid,
        in_specs=[
            pl.BlockSpec((tm, tk), lambda i, j, kk: (i, kk)),
            pl.BlockSpec((tk, tn), lambda i, j, kk: (kk, j)),
            pl.BlockSpec((1, tn), lambda i, j, kk: (0, j)),
        ],
        out_specs=pl.BlockSpec((tm, tn), lambda i, j, kk: (i, j)),
        scratch_shapes=[pltpu.VMEM((tm, tn), jnp.float32)],
        compiler_params=pltpu.CompilerParams(
            dimension_semantics=("parallel", "parallel", "arbitrary")),
    )(x, w, b2)


# ----------------------------------------------------------------------------
# Conv2d(ks=5, pad=2, stride) + LeakyReLU(0.01) via im2col + the Pallas matmul.
# ----------------------------------------------------------------------------
def conv2d_sn_lrelu(x_nchw, weight, bias, *, ks=5, pad=2, s=2):
    """weight: PyTorch Conv2d layout (out_c, in_c, kh, kw); bias: (out_c,)."""
    n, cin, h, w = x_nchw.shape
    cout = weight.shape[0]
    oh = (h + 2 * pad - ks) // s + 1
    ow = (w + 2 * pad - ks) // s + 1

    # ---- glue (plain JAX): NHWC, pad, im2col -> lane-dense 2D matrix --------
    x = jnp.transpose(x_nchw, (0, 2, 3, 1))                     # NHWC
    xp = jnp.pad(x, ((0, 0), (pad, pad), (pad, pad), (0, 0)))
    cols = []
    for ky in range(ks):
        for kx in range(ks):
            cols.append(xp[:, ky:ky + s * (oh - 1) + 1:s,
                           kx:kx + s * (ow - 1) + 1:s, :])
    # K ordered as (ky, kx, cin); M = N*OH*OW (batch folded into the matmul M)
    patches = jnp.concatenate(cols, axis=-1).reshape(n * oh * ow, ks * ks * cin)
    # weight -> (ks*ks*cin, cout), matching the patch K-ordering.
    w2 = jnp.transpose(weight, (2, 3, 1, 0)).reshape(ks * ks * cin, cout)

    y = matmul_bias_act(patches, w2, bias, act="lrelu")         # Pallas hot path
    y = y.reshape(n, oh, ow, cout)
    return jnp.transpose(y, (0, 3, 1, 2))                       # back to NCHW


# ----------------------------------------------------------------------------
# Discriminator forward.
# ----------------------------------------------------------------------------
_CONV_CFG = [(3, 64, 2), (64, 128, 2), (128, 256, 2), (256, 512, 1), (512, 1024, 1)]


def discriminator_forward(params, x1, x2, x3):
    # TODO(synk): spectral_norm (spec=True layers) is a training-time weight
    # reparameterization; this forward consumes the already-normalized weights.
    x = jnp.concatenate([x1, x2, x3], axis=1)                   # NCHW, C=3
    features = []
    for (w, b), (_, _, s) in zip(params["convs"], _CONV_CFG):
        x = conv2d_sn_lrelu(x, w, b, ks=5, pad=2, s=s)
        features.append(x)

    flat = x.reshape(-1, 1024 * 8 * 8)                          # == torch .view
    w1, b1 = params["fc1"]
    w2, b2 = params["fc2"]
    w3, b3 = params["fc3"]
    y1 = matmul_bias_act(flat, w1.T, b1, act="sigmoid")[:, 0]   # squeeze(-1)
    y2 = matmul_bias_act(flat, w2.T, b2, act="softmax")
    y3 = matmul_bias_act(flat, w3.T, b3, act="softmax")
    return y1, y2, y3, features


def init_discriminator_params(key, num_fonts=8, num_characters=16):
    params = {"convs": []}
    for (cin, cout, _) in _CONV_CFG:
        key, kw_, kb_ = jax.random.split(key, 3)
        bound = 1.0 / jnp.sqrt(jnp.float32(cin * 5 * 5))
        w = jax.random.uniform(kw_, (cout, cin, 5, 5),
                               minval=-bound, maxval=bound, dtype=jnp.float32)
        b = jax.random.uniform(kb_, (cout,),
                               minval=-bound, maxval=bound, dtype=jnp.float32)
        params["convs"].append((w, b))
    feat = 1024 * 8 * 8
    for name, out_dim in (("fc1", 1), ("fc2", num_fonts), ("fc3", num_characters)):
        key, kw_, kb_ = jax.random.split(key, 3)
        bound = 1.0 / jnp.sqrt(jnp.float32(feat))
        w = jax.random.uniform(kw_, (out_dim, feat),
                               minval=-bound, maxval=bound, dtype=jnp.float32)
        b = jax.random.uniform(kb_, (out_dim,),
                               minval=-bound, maxval=bound, dtype=jnp.float32)
        params[name] = (w, b)
    return params


# ----------------------------------------------------------------------------
# Pure-JAX reference for verification.
# ----------------------------------------------------------------------------
def _ref_forward(params, x1, x2, x3):
    x = jnp.concatenate([x1, x2, x3], axis=1)
    feats = []
    for (w, b), (_, _, s) in zip(params["convs"], _CONV_CFG):
        y = jax.lax.conv_general_dilated(
            x, w, window_strides=(s, s), padding=[(2, 2), (2, 2)],
            dimension_numbers=("NCHW", "OIHW", "NCHW"))
        x = jax.nn.leaky_relu(y + b[None, :, None, None], negative_slope=0.01)
        feats.append(x)
    flat = x.reshape(-1, 1024 * 8 * 8)
    w1, b1 = params["fc1"]
    w2, b2 = params["fc2"]
    w3, b3 = params["fc3"]
    y1 = jax.nn.sigmoid(flat @ w1.T + b1)[:, 0]
    y2 = jax.nn.softmax(flat @ w2.T + b2, axis=1)
    y3 = jax.nn.softmax(flat @ w3.T + b3, axis=1)
    return y1, y2, y3, feats


if __name__ == "__main__":
    # Module-consistent shapes: the fc view(-1, 1024*8*8) forces 64x64 inputs;
    # conv1 takes 3 channels (the concat of three 1-channel inputs).  Batch=2,
    # small head sizes (num_fonts=8, num_characters=16) via constructor args.
    key = jax.random.PRNGKey(0)
    kp, k1, k2, k3 = jax.random.split(key, 4)
    params = init_discriminator_params(kp, num_fonts=8, num_characters=16)

    x1 = jax.random.normal(k1, (2, 1, 64, 64), dtype=jnp.float32)
    x2 = jax.random.normal(k2, (2, 1, 64, 64), dtype=jnp.float32)
    x3 = jax.random.normal(k3, (2, 1, 64, 64), dtype=jnp.float32)

    y1, y2, y3, feats = jax.block_until_ready(
        discriminator_forward(params, x1, x2, x3))

    r1, r2, r3, rfeats = jax.block_until_ready(_ref_forward(params, x1, x2, x3))

    assert y1.shape == (2,) and y2.shape == (2, 8) and y3.shape == (2, 16)
    assert feats[-1].shape == (2, 1024, 8, 8)
    for got, ref in list(zip(feats, rfeats)) + [(y1, r1), (y2, r2), (y3, r3)]:
        err = float(jnp.max(jnp.abs(got - ref)))
        assert jnp.allclose(got, ref, atol=1e-3, rtol=1e-3), err

    print("KERNEL_OK")
</pallas_src>

<mosaic_0001>
module attributes {stable_mosaic.version = 11 : i64} {
  func.func @_matmul_bias_act_kernel(%arg0: i32, %arg1: i32, %arg2: i32, %arg3: memref<256x75xf32, #tpu.memory_space<vmem>>, %arg4: memref<75x64xf32, #tpu.memory_space<vmem>>, %arg5: memref<1x64xf32, #tpu.memory_space<vmem>>, %arg6: memref<256x64xf32, #tpu.memory_space<vmem>>, %arg7: memref<256x64xf32, #tpu.memory_space<vmem>>) attributes {dimension_semantics = [#tpu.dimension_semantics<parallel>, #tpu.dimension_semantics<parallel>, #tpu.dimension_semantics<arbitrary>], iteration_bounds = array<i64: 8, 1, 1>, scalar_prefetch = 0 : i64, scratch_operands = 1 : i64, tpu.core_type = #tpu.core_type<tc>, window_params = [{transform_indices = @transform_0, window_bounds = array<i64: 256, 75>}, {transform_indices = @transform_1, window_bounds = array<i64: 75, 64>}, {transform_indices = @transform_2, window_bounds = array<i64: 1, 64>}, {transform_indices = @transform_3, window_bounds = array<i64: 256, 64>}]} {
    %c0_i32 = arith.constant 0 : i32
    %0 = arith.cmpi eq, %arg2, %c0_i32 : i32
    %1 = arith.extui %0 : i1 to i32
    %c0_i32_0 = arith.constant 0 : i32
    %2 = arith.cmpi ne, %1, %c0_i32_0 : i32
    scf.if %2 {
      %cst_10 = arith.constant 0.000000e+00 : f32
      %12 = vector.broadcast %cst_10 : f32 to vector<256x64xf32>
      %c0_11 = arith.constant 0 : index
      %c0_12 = arith.constant 0 : index
      %13 = vector.load %arg7[%c0_11, %c0_12] : memref<256x64xf32, #tpu.memory_space<vmem>>, vector<256x64xf32>
      tpu.vector_store %arg7[%c0_11, %c0_12], %12 {strides = array<i32>} : memref<256x64xf32, #tpu.memory_space<vmem>>, vector<256x64xf32>,
    } else {
    }
    %c0 = arith.constant 0 : index
    %c0_1 = arith.constant 0 : index
    %3 = vector.load %arg7[%c0, %c0_1] : memref<256x64xf32, #tpu.memory_space<vmem>>, vector<256x64xf32>
    %c0_2 = arith.constant 0 : index
    %c0_3 = arith.constant 0 : index
    %4 = vector.load %arg3[%c0_2, %c0_3] : memref<256x75xf32, #tpu.memory_space<vmem>>, vector<256x75xf32>
    %c0_4 = arith.constant 0 : index
    %c0_5 = arith.constant 0 : index
    %5 = vector.load %arg4[%c0_4, %c0_5] : memref<75x64xf32, #tpu.memory_space<vmem>>, vector<75x64xf32>
    %cst = arith.constant dense<0.000000e+00> : vector<256x64xf32>
    %6 = tpu.matmul %4, %5, %cst {dimension_numbers = #tpu.dot_dimension_numbers<[1], [0], [0], [1], [0, 0, 1, 1], [], []>} : vector<256x75xf32>, vector<75x64xf32>, vector<256x64xf32> -> vector<256x64xf32>
    %7 = arith.addf %3, %6 : vector<256x64xf32>
    %c0_6 = arith.constant 0 : index
    %c0_7 = arith.constant 0 : index
    %8 = vector.load %arg7[%c0_6, %c0_7] : memref<256x64xf32, #tpu.memory_space<vmem>>, vector<256x64xf32>
    tpu.vector_store %arg7[%c0_6, %c0_7], %7 {strides = array<i32>} : memref<256x64xf32, #tpu.memory_space<vmem>>, vector<256x64xf32>,
    %c0_i32_8 = arith.constant 0 : i32
    %9 = arith.cmpi eq, %arg2, %c0_i32_8 : i32
    %10 = arith.extui %9 : i1 to i32
    %c0_i32_9 = arith.constant 0 : i32
    %11 = arith.cmpi ne, %10, %c0_i32_9 : i32
    scf.if %11 {
      %c0_10 = arith.constant 0 : index
      %c0_11 = arith.constant 0 : index
      %12 = vector.load %arg7[%c0_10, %c0_11] : memref<256x64xf32, #tpu.memory_space<vmem>>, vector<256x64xf32>
      %c0_12 = arith.constant 0 : index
      %c0_13 = arith.constant 0 : index
      %13 = vector.load %arg5[%c0_12, %c0_13] : memref<1x64xf32, #tpu.memory_space<vmem>>, vector<1x64xf32>
      %14 = vector.broadcast %13 : vector<1x64xf32> to vector<256x64xf32>
      %15 = arith.addf %12, %14 : vector<256x64xf32>
      %cst_14 = arith.constant 0.000000e+00 : f32
      %16 = vector.broadcast %cst_14 : f32 to vector<256x64xf32>
      %17 = arith.cmpf oge, %15, %16 : vector<256x64xf32>
      %cst_15 = arith.constant 0.00999999977 : f32
      %18 = vector.broadcast %cst_15 : f32 to vector<256x64xf32>
      %19 = arith.mulf %18, %15 : vector<256x64xf32>
      %20 = arith.select %17, %15, %19 : vector<256x64xi1>, vector<256x64xf32>
      %c0_16 = arith.constant 0 : index
      %c0_17 = arith.constant 0 : index
      %21 = vector.load %arg6[%c0_16, %c0_17] : memref<256x64xf32, #tpu.memory_space<vmem>>, vector<256x64xf32>
      tpu.vector_store %arg6[%c0_16, %c0_17], %20 {strides = array<i32>} : memref<256x64xf32, #tpu.memory_space<vmem>>, vector<256x64xf32>,
    } else {
    }
    return
  }
  func.func @transform_0(%arg0: i32, %arg1: i32, %arg2: i32) -> (i32, i32) {
    %c0_i32 = arith.constant 0 : i32
    return %arg0, %arg2 : i32, i32
  }
  func.func @transform_1(%arg0: i32, %arg1: i32, %arg2: i32) -> (i32, i32) {
    %c0_i32 = arith.constant 0 : i32
    return %arg2, %arg1 : i32, i32
  }
  func.func @transform_2(%arg0: i32, %arg1: i32, %arg2: i32) -> (i32, i32) {
    %c0_i32 = arith.constant 0 : i32
    %c0_i32_0 = arith.constant 0 : i32
    return %c0_i32, %arg1 : i32, i32
  }
  func.func @transform_3(%arg0: i32, %arg1: i32, %arg2: i32) -> (i32, i32) {
    %c0_i32 = arith.constant 0 : i32
    return %arg0, %arg1 : i32, i32
  }
}

</mosaic_0001>

<bundles_post_ra>
// kernel: tpu_custom_call.1
= control target key start
LH: loop header
LB: loop body
LE: loop exit
PB: predicated region body
PF: predicated region fallthrough
CT: control target
= control target key end

     0   :  { %s1321_s12 = smov 0   ;;  %s1323_s13 = smov 0   ;;  %s1647_s0 = inlined_call_operand.vmem [shape: f32[2048,75], index: 0, kind: input, shape index: {}]   ;;  %s1648_s1 = inlined_call_operand.vmem [shape: f32[75,64], index: 1, kind: input, shape index: {}]   ;;  %s1649_s2 = inlined_call_operand.vmem [shape: f32[1,64], index: 2, kind: input, shape index: {}]   ;;  %s1650_s3 = inlined_call_operand.vmem [shape: f32[2048,64], index: 3, kind: output, shape index: {}]  }
   0x1   :  { %s1325_s14 = smov 0  }
   0x2 LB: > { %s32_s15 = sadd.s32 1, %s1294_s13  ;;  %p1080_p0 = scmp.ge.s32.totalorder %s1298_s14, 1  ;;  %s1298_s14 = sphi %s1325_s14, %s13_s14   ;;  %s1294_s13 = sphi %s1323_s13, %s1652_s13   ;;  %s1290_s12 = sphi %s1321_s12, %s1651_s12  }
   0x3   : > { %p34_p1 = scmp.ge.s32.totalorder %s32_s15, 8  ;;  %p188_p2 = scmp.lt.s32.totalorder %s1298_s14, 9 }
   0x5   : > { %s1654_s15 = smov (%p34_p1, %s32_s15), 0  ;;  %p189_p3 = pnand %p1080_p0, %p188_p2 }
   0x6   : > { %s1081_s20 = sshll.u32 (!%p189_p3), %s1290_s12, 5 }
   0x7   : > { %192 = sbr.rel (%p189_p3) target bundleno = 284 (0x11c), region = 32  ;;  %p230_p4 = scmp.lt.s32.totalorder (!%p189_p3), %s1081_s20, 255 }
   0xc   : > { %v369_v0 = vld [vmem:[%s1648_s1 + $0x48] sm:$0x7]  ;;  %vm467_vm0 = vcmask 1042432   ;;  %v368_v1 = vld [vmem:[%s1648_s1 + $0x40] sm:$0xff]  ;;  %vm263_vm1 = vcmask 523264   ;;  %v367_v2 = vld [vmem:[%s1648_s1 + $0x38] sm:$0xff] }
   0xd   : > { %1163 = vmatprep.subr.msk.mxu0 %vm467_vm0, %v369_v0  ;;  %1231 = vmatprep.subr.msk.mxu1 %vm467_vm0, %v369_v0  ;;  %v1300_v3 = vmov 0.0   ;;  %v366_v4 = vld [vmem:[%s1648_s1 + $0x30] sm:$0xff]  ;;  %v365_v5 = vld [vmem:[%s1648_s1 + $0x28] sm:$0xff]  ;;  %v364_v6 = vld [vmem:[%s1648_s1 + $0x20] sm:$0xff]  ;;  %s1656_s20 = smov (!%p230_p4, %s1081_s20), 255  ;;  %vm370_vm2 = vcmask 613376  }
   0xe   : > { %1164 = vmatpush3.msk.msra.mxu0 %vm467_vm0, %v369_v0  ;;  %1241 = vmatpush3.msk.msra.mxu1 %vm467_vm0, %v369_v0  ;;  %265 = vst.msk [vmem:[#allocation2 + $0x8] sm:$0xff] %vm263_vm1, %v1300_v3  ;;  %264 = vst.msk [vmem:[#allocation2] sm:$0xff] %vm263_vm1, %v1300_v3  ;;  %v363_v7 = vld [vmem:[%s1648_s1 + $0x18] sm:$0xff]  ;;  %v362_v8 = vld [vmem:[%s1648_s1 + $0x10] sm:$0xff]  ;;  %s1082_s6 = sshll.u32 %s1656_s20, 3 }
   0xf   : > { %1165 = vmatprep.subr.mxu0 %v368_v1  ;;  %1232 = vmatprep.subr.mxu1 %v368_v1  ;;  %266 = vst.msk [vmem:[#allocation2 + $0x10] sm:$0xff] %vm263_vm1, %v1300_v3  ;;  %267 = vst.msk [vmem:[#allocation2 + $0x18] sm:$0xff] %vm263_vm1, %v1300_v3  ;;  %v361_v9 = vld [vmem:[%s1648_s1 + $0x8] sm:$0xff]  ;;  %s1413_s11 = scalar_lea.vmem %s1647_s0, %s1082_s6  ;;  %v360_v10 = vld [vmem:[%s1648_s1] sm:$0xff]  ;;  %s1504_s22 = scalar_lea.vmem %s1650_s3, %s1082_s6 }
  0x10   : > { %268 = vst.msk [vmem:[#allocation2 + $0x20] sm:$0xff] %vm263_vm1, %v1300_v3  ;;  %269 = vst.msk [vmem:[#allocation2 + $0x28] sm:$0xff] %vm263_vm1, %v1300_v3  ;;  %1166 = vmatpush3.msra.mxu0 %v368_v1  ;;  %1242 = vmatpush3.msra.mxu1 %v368_v1  ;;  %v328_v11 = vld [vmem:[%s1413_s11] sm:$0xff]  ;;  %v329_v13 = vld [vmem:[%s1413_s11 + $0x8] sm:$0xff] }
  0x11   : > { %270 = vst.msk [vmem:[#allocation2 + $0x30] sm:$0xff] %vm263_vm1, %v1300_v3  ;;  %271 = vst.msk [vmem:[#allocation2 + $0x38] sm:$0xff] %vm263_vm1, %v1300_v3  ;;  %1167 = vmatprep.subr.mxu0 %v367_v2  ;;  %1233 = vmatprep.subr.mxu1 %v367_v2  ;;  %v344_v12 = vld [vmem:[%s1413_s11 + $0x80] sm:$0xff]  ;;  %v345_v14 = vld [vmem:[%s1413_s11 + $0x88] sm:$0xff] }
  0x12   : > { %272 = vst.msk [vmem:[#allocation2 + $0x40] sm:$0xff] %vm263_vm1, %v1300_v3  ;;  %273 = vst.msk [vmem:[#allocation2 + $0x48] sm:$0xff] %vm263_vm1, %v1300_v3  ;;  %1168 = vmatpush3.msra.mxu0 %v367_v2  ;;  %1243 = vmatpush3.msra.mxu1 %v367_v2  ;;  %v330_v15 = vld [vmem:[%s1413_s11 + $0x10] sm:$0xff]  ;;  %v331_v17 = vld [vmem:[%s1413_s11 + $0x18] sm:$0xff] }
  0x13   : > { %274 = vst.msk [vmem:[#allocation2 + $0x50] sm:$0xff] %vm263_vm1, %v1300_v3  ;;  %275 = vst.msk [vmem:[#allocation2 + $0x58] sm:$0xff] %vm263_vm1, %v1300_v3  ;;  %1169 = vmatprep.subr.mxu0 %v366_v4  ;;  %1234 = vmatprep.subr.mxu1 %v366_v4  ;;  %v346_v16 = vld [vmem:[%s1413_s11 + $0x90] sm:$0xff]  ;;  %v347_v18 = vld [vmem:[%s1413_s11 + $0x98] sm:$0xff] }
  0x14   : > { %276 = vst.msk [vmem:[#allocation2 + $0x60] sm:$0xff] %vm263_vm1, %v1300_v3  ;;  %277 = vst.msk [vmem:[#allocation2 + $0x68] sm:$0xff] %vm263_vm1, %v1300_v3  ;;  %1170 = vmatpush3.msra.mxu0 %v366_v4  ;;  %1244 = vmatpush3.msra.mxu1 %v366_v4  ;;  %v332_v19 = vld [vmem:[%s1413_s11 + $0x20] sm:$0xff]  ;;  %v333_v21 = vld [vmem:[%s1413_s11 + $0x28] sm:$0xff] }
  0x15   : > { %278 = vst.msk [vmem:[#allocation2 + $0x70] sm:$0xff] %vm263_vm1, %v1300_v3  ;;  %279 = vst.msk [vmem:[#allocation2 + $0x78] sm:$0xff] %vm263_vm1, %v1300_v3  ;;  %1171 = vmatprep.subr.mxu0 %v365_v5  ;;  %1235 = vmatprep.subr.mxu1 %v365_v5  ;;  %v348_v20 = vld [vmem:[%s1413_s11 + $0xa0] sm:$0xff]  ;;  %v349_v22 = vld [vmem:[%s1413_s11 + $0xa8] sm:$0xff] }
  0x16   : > { %280 = vst.msk [vmem:[#allocation2 + $0x80] sm:$0xff] %vm263_vm1, %v1300_v3  ;;  %281 = vst.msk [vmem:[#allocation2 + $0x88] sm:$0xff] %vm263_vm1, %v1300_v3  ;;  %1172 = vmatpush3.msra.mxu0 %v365_v5  ;;  %1245 = vmatpush3.msra.mxu1 %v365_v5  ;;  %v334_v23 = vld [vmem:[%s1413_s11 + $0x30] sm:$0xff]  ;;  %v335_v25 = vld [vmem:[%s1413_s11 + $0x38] sm:$0xff] }
  0x17   : > { %282 = vst.msk [vmem:[#allocation2 + $0x90] sm:$0xff] %vm263_vm1, %v1300_v3  ;;  %283 = vst.msk [vmem:[#allocation2 + $0x98] sm:$0xff] %vm263_vm1, %v1300_v3  ;;  %1173 = vmatprep.subr.mxu0 %v364_v6  ;;  %1236 = vmatprep.subr.mxu1 %v364_v6  ;;  %v350_v24 = vld [vmem:[%s1413_s11 + $0xb0] sm:$0xff]  ;;  %v351_v26 = vld [vmem:[%s1413_s11 + $0xb8] sm:$0xff] }
  0x18   : > { %284 = vst.msk [vmem:[#allocation2 + $0xa0] sm:$0xff] %vm263_vm1, %v1300_v3  ;;  %285 = vst.msk [vmem:[#allocation2 + $0xa8] sm:$0xff] %vm263_vm1, %v1300_v3  ;;  %1174 = vmatpush3.msra.mxu0 %v364_v6  ;;  %1246 = vmatpush3.msra.mxu1 %v364_v6  ;;  %v336_v27 = vld [vmem:[%s1413_s11 + $0x40] sm:$0xff]  ;;  %v337_v29 = vld [vmem:[%s1413_s11 + $0x48] sm:$0xff] }
  0x19   : > { %286 = vst.msk [vmem:[#allocation2 + $0xb0] sm:$0xff] %vm263_vm1, %v1300_v3  ;;  %287 = vst.msk [vmem:[#allocation2 + $0xb8] sm:$0xff] %vm263_vm1, %v1300_v3  ;;  %1175 = vmatprep.subr.mxu0 %v363_v7  ;;  %1237 = vmatprep.subr.mxu1 %v363_v7  ;;  %v352_v28 = vld [vmem:[%s1413_s11 + $0xc0] sm:$0xff]  ;;  %v353_v30 = vld [vmem:[%s1413_s11 + $0xc8] sm:$0xff] }
  0x1a   : > { %288 = vst.msk [vmem:[#allocation2 + $0xc0] sm:$0xff] %vm263_vm1, %v1300_v3  ;;  %289 = vst.msk [vmem:[#allocation2 + $0xc8] sm:$0xff] %vm263_vm1, %v1300_v3  ;;  %1176 = vmatpush3.msra.mxu0 %v363_v7  ;;  %1247 = vmatpush3.msra.mxu1 %v363_v7  ;;  %v338_v31 = vld [vmem:[%s1413_s11 + $0x50] sm:$0xff]  ;;  %v339_v33 = vld [vmem:[%s1413_s11 + $0x58] sm:$0xff] }
  0x1b   : > { %290 = vst.msk [vmem:[#allocation2 + $0xd0] sm:$0xff] %vm263_vm1, %v1300_v3  ;;  %291 = vst.msk [vmem:[#allocation2 + $0xd8] sm:$0xff] %vm263_vm1, %v1300_v3  ;;  %1177 = vmatprep.subr.mxu0 %v362_v8  ;;  %1238 = vmatprep.subr.mxu1 %v362_v8  ;;  %v354_v32 = vld [vmem:[%s1413_s11 + $0xd0] sm:$0xff]  ;;  %v355_v34 = vld [vmem:[%s1413_s11 + $0xd8] sm:$0xff] }
  0x1c   : > { %292 = vst.msk [vmem:[#allocation2 + $0xe0] sm:$0xff] %vm263_vm1, %v1300_v3  ;;  %293 = vst.msk [vmem:[#allocation2 + $0xe8] sm:$0xff] %vm263_vm1, %v1300_v3  ;;  %1178 = vmatpush3.msra.mxu0 %v362_v8  ;;  %1248 = vmatpush3.msra.mxu1 %v362_v8  ;;  %v340_v35 = vld [vmem:[%s1413_s11 + $0x60] sm:$0xff]  ;;  %v341_v37 = vld [vmem:[%s1413_s11 + $0x68] sm:$0xff] }
  0x1d   : > { %294 = vst.msk [vmem:[#allocation2 + $0xf0] sm:$0xff] %vm263_vm1, %v1300_v3  ;;  %295 = vst.msk [vmem:[#allocation2 + $0xf8] sm:$0xff] %vm263_vm1, %v1300_v3  ;;  %1179 = vmatprep.subr.mxu0 %v361_v9  ;;  %1239 = vmatprep.subr.mxu1 %v361_v9  ;;  %v356_v36 = vld [vmem:[%s1413_s11 + $0xe0] sm:$0xff]  ;;  %v357_v38 = vld [vmem:[%s1413_s11 + $0xe8] sm:$0xff] }
  0x1e   : > { %1180 = vmatpush3.msra.mxu0 %v361_v9  ;;  %1249 = vmatpush3.msra.mxu1 %v361_v9  ;;  %v342_v39 = vld [vmem:[%s1413_s11 + $0x70] sm:$0xff]  ;;  %v343_v41 = vld [vmem:[%s1413_s11 + $0x78] sm:$0xff]  ;;  %v297_v43 = vld [vmem:[#allocation2 + $0x8] sm:$0xff] }
  0x1f   : > { %1181 = vmatprep.subr.mxu0 %v360_v10  ;;  %1240 = vmatprep.subr.mxu1 %v360_v10  ;;  %v358_v40 = vld [vmem:[%s1413_s11 + $0xf0] sm:$0xff]  ;;  %v359_v42 = vld [vmem:[%s1413_s11 + $0xf8] sm:$0xff]  ;;  %v313_v44 = vld [vmem:[#allocation2 + $0x88] sm:$0xff] }
  0x20   : > { %1182 = vmatpush3.msra.mxu0 %v360_v10  ;;  %1250 = vmatpush3.msra.mxu1 %v360_v10  ;;  %v296_v47 = vld [vmem:[#allocation2] sm:$0xff]  ;;  %v299_v53 = vld [vmem:[#allocation2 + $0x18] sm:$0xff]  ;;  %v298_v59 = vld [vmem:[#allocation2 + $0x10] sm:$0xff] }
  0x21   : > { %1183 = vmatprep.mubr.msk.f32.mxu0 %vm370_vm2, %v328_v11  ;;  %1207 = vmatprep.mubr.msk.f32.mxu1 %vm370_vm2, %v344_v12  ;;  %v312_v48 = vld [vmem:[#allocation2 + $0x80] sm:$0xff]  ;;  %v315_v54 = vld [vmem:[#allocation2 + $0x98] sm:$0xff]  ;;  %v314_v60 = vld [vmem:[#allocation2 + $0x90] sm:$0xff] }
  0x22   : > { %1184 = vmatmul.mubr.msk.f32.vlgmr.msra.gmra.mxu0 %vm370_vm2, %v329_v13  ;;  %1208 = vmatmul.mubr.msk.f32.vlgmr.msra.gmra.mxu1 %vm370_vm2, %v345_v14  ;;  %v301_v1 = vld [vmem:[#allocation2 + $0x28] sm:$0xff]  ;;  %v1491_v5 = vld [vmem:[%s1649_s2] ss:$0 sm:$0xff] }
  0x23   : > { %1186 = vmatprep.mubr.msk.f32.mxu0 %vm370_vm2, %v330_v15  ;;  %1210 = vmatprep.mubr.msk.f32.mxu1 %vm370_vm2, %v346_v16  ;;  %v317_v2 = vld [vmem:[#allocation2 + $0xa8] sm:$0xff]  ;;  %v300_v8 = vld [vmem:[#allocation2 + $0x20] sm:$0xff] }
  0x24   : > { %v316_v9 = vld [vmem:[#allocation2 + $0xa0] sm:$0xff] }
  0x26   : > { %1187 = vmatmul.mubr.msk.f32.gmra.mxu0 %vm370_vm2, %v331_v17  ;;  %1211 = vmatmul.mubr.msk.f32.gmra.mxu1 %vm370_vm2, %v347_v18 }
  0x27   : > { %1189 = vmatprep.mubr.msk.f32.mxu0 %vm370_vm2, %v332_v19  ;;  %1213 = vmatprep.mubr.msk.f32.mxu1 %vm370_vm2, %v348_v20  ;;  %v303_v20 = vld [vmem:[#allocation2 + $0x38] sm:$0xff] }
  0x2a   : > { %1190 = vmatmul.mubr.msk.f32.gmra.mxu0 %vm370_vm2, %v333_v21  ;;  %1214 = vmatmul.mubr.msk.f32.gmra.mxu1 %vm370_vm2, %v349_v22  ;;  %v319_v21 = vld [vmem:[#allocation2 + $0xb8] sm:$0xff] }
  0x2b   : > { %1192 = vmatprep.mubr.msk.f32.mxu0 %vm370_vm2, %v334_v23  ;;  %1216 = vmatprep.mubr.msk.f32.mxu1 %vm370_vm2, %v350_v24 }
  0x2e   : > { %1193 = vmatmul.mubr.msk.f32.gmra.mxu0 %vm370_vm2, %v335_v25  ;;  %1217 = vmatmul.mubr.msk.f32.gmra.mxu1 %vm370_vm2, %v351_v26 }
  0x2f   : > { %1195 = vmatprep.mubr.msk.f32.mxu0 %vm370_vm2, %v336_v27  ;;  %1219 = vmatprep.mubr.msk.f32.mxu1 %vm370_vm2, %v352_v28 }
  0x32   : > { %1196 = vmatmul.mubr.msk.f32.gmra.mxu0 %vm370_vm2, %v337_v29  ;;  %1220 = vmatmul.mubr.msk.f32.gmra.mxu1 %vm370_vm2, %v353_v30 }
  0x33   : > { %1198 = vmatprep.mubr.msk.f32.mxu0 %vm370_vm2, %v338_v31  ;;  %1222 = vmatprep.mubr.msk.f32.mxu1 %vm370_vm2, %v354_v32 }
  0x36   : > { %1199 = vmatmul.mubr.msk.f32.gmra.mxu0 %vm370_vm2, %v339_v33  ;;  %1223 = vmatmul.mubr.msk.f32.gmra.mxu1 %vm370_vm2, %v355_v34  ;;  %v302_v34 = vld [vmem:[#allocation2 + $0x30] sm:$0xff] }
  0x37   : > { %1201 = vmatprep.mubr.msk.f32.mxu0 %vm370_vm2, %v340_v35  ;;  %1225 = vmatprep.mubr.msk.f32.mxu1 %vm370_vm2, %v356_v36 }
  0x3a   : > { %1202 = vmatmul.mubr.msk.f32.gmra.mxu0 %vm370_vm2, %v341_v37  ;;  %1226 = vmatmul.mubr.msk.f32.gmra.mxu1 %vm370_vm2, %v357_v38 }
  0x3b   : > { %1204 = vmatprep.mubr.msk.f32.mxu0 %vm370_vm2, %v342_v39  ;;  %1228 = vmatprep.mubr.msk.f32.mxu1 %vm370_vm2, %v358_v40 }
  0x3e   : > { %1205 = vmatmul.mubr.msk.f32.gmra.mxu0 %vm370_vm2, %v343_v41  ;;  %1229 = vmatmul.mubr.msk.f32.gmra.mxu1 %vm370_vm2, %v359_v42  ;;  %v318_v41 = vld [vmem:[#allocation2 + $0xb0] sm:$0xff]  ;;  %v305_v42 = vld [vmem:[#allocation2 + $0x48] sm:$0xff] }
  0xe2   : > { %v1185_v45 = vpop.f32.mrf.mxu0  ;;  %v1209_v46 = vpop.f32.mrf.mxu1 }
  0xe3   : > { %v697_v49 = vadd.f32 %v1185_v45, %v297_v43  ;;  %v713_v50 = vadd.f32 %v1209_v46, %v313_v44  ;;  %v321_v43 = vld [vmem:[#allocation2 + $0xc8] sm:$0xff] }
  0xe4   : > { %v537_v51 = vpop.f32.mrf.mxu0  ;;  %v617_v52 = vpop.f32.mrf.mxu1 }
  0xe5   : > { %730 = vst.msk [vmem:[#allocation2 + $0x8] sm:$0xff] %vm263_vm1, %v697_v49  ;;  %746 = vst.msk [vmem:[#allocation2 + $0x88] sm:$0xff] %vm263_vm1, %v713_v50  ;;  %v696_v55 = vadd.f32 %v537_v51, %v296_v47  ;;  %v712_v56 = vadd.f32 %v617_v52, %v312_v48 }
  0xe6   : > { %v1188_v57 = vpop.f32.mrf.mxu0  ;;  %v1212_v58 = vpop.f32.mrf.mxu1 }
  0xe7   : > { %729 = vst.msk [vmem:[#allocation2] sm:$0xff] %vm263_vm1, %v696_v55  ;;  %745 = vst.msk [vmem:[#allocation2 + $0x80] sm:$0xff] %vm263_vm1, %v712_v56  ;;  %v699_v61 = vadd.f32 %v1188_v57, %v299_v53  ;;  %v715_v62 = vadd.f32 %v1212_v58, %v315_v54 }
  0xe8   : > { %v547_v63 = vpop.f32.mrf.mxu0  ;;  %v627_v0 = vpop.f32.mrf.mxu1 }
  0xe9   : > { %732 = vst.msk [vmem:[#allocation2 + $0x18] sm:$0xff] %vm263_vm1, %v699_v61  ;;  %748 = vst.msk [vmem:[#allocation2 + $0x98] sm:$0xff] %vm263_vm1, %v715_v62  ;;  %v698_v3 = vadd.f32 %v547_v63, %v298_v59  ;;  %v714_v4 = vadd.f32 %v627_v0, %v314_v60 }
  0xea   : > { %v1191_v6 = vpop.f32.mrf.mxu0  ;;  %v1215_v7 = vpop.f32.mrf.mxu1 }
  0xeb   : > { %731 = vst.msk [vmem:[#allocation2 + $0x10] sm:$0xff] %vm263_vm1, %v698_v3  ;;  %747 = vst.msk [vmem:[#allocation2 + $0x90] sm:$0xff] %vm263_vm1, %v714_v4  ;;  %v701_v10 = vadd.f32 %v1191_v6, %v301_v1  ;;  %v717_v11 = vadd.f32 %v1215_v7, %v317_v2 }
  0xec   : > { %v765_v12 = vld [vmem:[#allocation2 + $0x8] sm:$0xff]  ;;  %v557_v14 = vpop.f32.mrf.mxu0  ;;  %v637_v15 = vpop.f32.mrf.mxu1 }
  0xed   : > { %v781_v13 = vld [vmem:[#allocation2 + $0x88] sm:$0xff]  ;;  %v804_v16 = vadd.f32 %v1491_v5, %v765_v12  ;;  %734 = vst.msk [vmem:[#allocation2 + $0x28] sm:$0xff] %vm263_vm1, %v701_v10  ;;  %750 = vst.msk [vmem:[#allocation2 + $0xa8] sm:$0xff] %vm263_vm1, %v717_v11  ;;  %v700_v18 = vadd.f32 %v557_v14, %v300_v8  ;;  %v716_v19 = vadd.f32 %v637_v15, %v316_v9 }
  0xee   : > { %v820_v17 = vadd.f32 %v1491_v5, %v781_v13  ;;  %v764_v22 = vld [vmem:[#allocation2] sm:$0xff]  ;;  %v1194_v24 = vpop.f32.mrf.mxu0  ;;  %v1218_v25 = vpop.f32.mrf.mxu1 }
  0xef   : > { %v780_v23 = vld [vmem:[#allocation2 + $0x80] sm:$0xff]  ;;  %vm836_vm3 = vcmp.ge.f32.partialorder %v804_v16, 0.0  ;;  %v868_v26 = vmul.f32 0.01, %v804_v16  ;;  %733 = vst.msk [vmem:[#allocation2 + $0x20] sm:$0xff] %vm263_vm1, %v700_v18  ;;  %749 = vst.msk [vmem:[#allocation2 + $0xa0] sm:$0xff] %vm263_vm1, %v716_v19  ;;  %v803_v28 = vadd.f32 %v1491_v5, %v764_v22  ;;  %v703_v32 = vadd.f32 %v1194_v24, %v303_v20 }
  0xf0   : > { %vm852_vm4 = vcmp.ge.f32.partialorder %v820_v17, 0.0  ;;  %v884_v27 = vmul.f32 0.01, %v820_v17  ;;  %v819_v29 = vadd.f32 %v1491_v5, %v780_v23  ;;  %v767_v30 = vld [vmem:[#allocation2 + $0x18] sm:$0xff]  ;;  %v719_v33 = vadd.f32 %v1218_v25, %v319_v21  ;;  %v567_v35 = vpop.f32.mrf.mxu0  ;;  %v647_v36 = vpop.f32.mrf.mxu1  ;;  %v304_v13 = vld [vmem:[#allocation2 + $0x40] sm:$0xff] }
  0xf1   : > { %v783_v31 = vld [vmem:[#allocation2 + $0x98] sm:$0xff]  ;;  %v900_v37 = vsel %vm836_vm3, %v804_v16, %v868_v26  ;;  %v806_v39 = vadd.f32 %v1491_v5, %v767_v30  ;;  %vm835_vm5 = vcmp.ge.f32.partialorder %v803_v28, 0.0  ;;  %v867_v44 = vmul.f32 0.01, %v803_v28  ;;  %736 = vst.msk [vmem:[#allocation2 + $0x38] sm:$0xff] %vm263_vm1, %v703_v32  ;;  %v320_v22 = vld [vmem:[#allocation2 + $0xc0] sm:$0xff] }
  0xf2   : > { %v916_v38 = vsel %vm852_vm4, %v820_v17, %v884_v27  ;;  %v822_v40 = vadd.f32 %v1491_v5, %v783_v31  ;;  %932 = vst.msk [vmem:[%s1504_s22 + $0x8] sm:$0xff] %vm263_vm1, %v900_v37  ;;  %vm851_vm6 = vcmp.ge.f32.partialorder %v819_v29, 0.0  ;;  %v883_v45 = vmul.f32 0.01, %v819_v29  ;;  %752 = vst.msk [vmem:[#allocation2 + $0xb8] sm:$0xff] %vm263_vm1, %v719_v33  ;;  %v1197_v46 = vpop.f32.mrf.mxu0  ;;  %v1221_v47 = vpop.f32.mrf.mxu1  ;;  %v766_v52 = vld [vmem:[#allocation2 + $0x10] sm:$0xff] }
  0xf3   : > { %948 = vst.msk [vmem:[%s1504_s22 + $0x88] sm:$0xff] %vm263_vm1, %v916_v38  ;;  %vm838_vm7 = vcmp.ge.f32.partialorder %v806_v39, 0.0  ;;  %v870_v48 = vmul.f32 0.01, %v806_v39  ;;  %v899_v50 = vsel %vm835_vm5, %v803_v28, %v867_v44  ;;  %v782_v53 = vld [vmem:[#allocation2 + $0x90] sm:$0xff]  ;;  %v702_v55 = vadd.f32 %v567_v35, %v302_v34  ;;  %v307_v27 = vld [vmem:[#allocation2 + $0x58] sm:$0xff] }
  0xf4   : > { %vm854_vm8 = vcmp.ge.f32.partialorder %v822_v40, 0.0  ;;  %v886_v49 = vmul.f32 0.01, %v822_v40  ;;  %v915_v51 = vsel %vm851_vm6, %v819_v29, %v883_v45  ;;  %v769_v54 = vld [vmem:[#allocation2 + $0x28] sm:$0xff]  ;;  %v718_v56 = vadd.f32 %v647_v36, %v318_v41  ;;  %v1518_v57 = vpop.f32.mrf.mxu0  ;;  %v1520_v58 = vpop.f32.mrf.mxu1  ;;  %931 = vst.msk [vmem:[%s1504_s22] sm:$0xff] %vm263_vm1, %v899_v50  ;;  %v323_v28 = vld [vmem:[#allocation2 + $0xd8] sm:$0xff] }
  0xf5   : > { %947 = vst.msk [vmem:[%s1504_s22 + $0x80] sm:$0xff] %vm263_vm1, %v915_v51  ;;  %v902_v59 = vsel %vm838_vm7, %v806_v39, %v870_v48  ;;  %v805_v61 = vadd.f32 %v1491_v5, %v766_v52  ;;  %v821_v62 = vadd.f32 %v1491_v5, %v782_v53  ;;  %v785_v63 = vld [vmem:[#allocation2 + $0xa8] sm:$0xff]  ;;  %v808_v0 = vadd.f32 %v1491_v5, %v769_v54  ;;  %v306_v29 = vld [vmem:[#allocation2 + $0x50] sm:$0xff]  ;;  %v308_v51 = vld [vmem:[#allocation2 + $0x60] sm:$0xff] }
  0xf6   : > { %v918_v60 = vsel %vm854_vm8, %v822_v40, %v886_v49  ;;  %934 = vst.msk [vmem:[%s1504_s22 + $0x18] sm:$0xff] %vm263_vm1, %v902_v59  ;;  %v824_v1 = vadd.f32 %v1491_v5, %v785_v63  ;;  %v768_v2 = vld [vmem:[#allocation2 + $0x20] sm:$0xff]  ;;  %735 = vst.msk [vmem:[#allocation2 + $0x30] sm:$0xff] %vm263_vm1, %v702_v55  ;;  %v705_v4 = vadd.f32 %v1197_v46, %v305_v42  ;;  %v1536_v7 = vpop.f32.mrf.mxu0  ;;  %v1538_v8 = vpop.f32.mrf.mxu1  ;;  %v322_v30 = vld [vmem:[#allocation2 + $0xd0] sm:$0xff] }
  0xf7   : > { %950 = vst.msk [vmem:[%s1504_s22 + $0x98] sm:$0xff] %vm263_vm1, %v918_v60  ;;  %v784_v3 = vld [vmem:[#allocation2 + $0xa0] sm:$0xff]  ;;  %751 = vst.msk [vmem:[#allocation2 + $0xb0] sm:$0xff] %vm263_vm1, %v718_v56  ;;  %v721_v6 = vadd.f32 %v1221_v47, %v321_v43  ;;  %vm837_vm9 = vcmp.ge.f32.partialorder %v805_v61, 0.0  ;;  %v869_v9 = vmul.f32 0.01, %v805_v61  ;;  %v807_v18 = vadd.f32 %v1491_v5, %v768_v2 }
  0xf8   : > { %vm853_vm10 = vcmp.ge.f32.partialorder %v821_v62, 0.0  ;;  %v885_v10 = vmul.f32 0.01, %v821_v62  ;;  %vm840_vm11 = vcmp.ge.f32.partialorder %v808_v0, 0.0  ;;  %v872_v11 = vmul.f32 0.01, %v808_v0  ;;  %v587_v14 = vpop.f32.mrf.mxu0  ;;  %v667_v15 = vpop.f32.mrf.mxu1 }
  0xf9   : > { %vm856_vm12 = vcmp.ge.f32.partialorder %v824_v1, 0.0  ;;  %v888_v12 = vmul.f32 0.01, %v824_v1  ;;  %738 = vst.msk [vmem:[#allocation2 + $0x48] sm:$0xff] %vm263_vm1, %v705_v4  ;;  %754 = vst.msk [vmem:[#allocation2 + $0xc8] sm:$0xff] %vm263_vm1, %v721_v6  ;;  %v901_v16 = vsel %vm837_vm9, %v805_v61, %v869_v9  ;;  %v823_v19 = vadd.f32 %v1491_v5, %v784_v3  ;;  %v771_v20 = vld [vmem:[#allocation2 + $0x38] sm:$0xff] }
  0xfa   : > { %v917_v17 = vsel %vm853_vm10, %v821_v62, %v885_v10  ;;  %v787_v21 = vld [vmem:[#allocation2 + $0xb8] sm:$0xff]  ;;  %933 = vst.msk [vmem:[%s1504_s22 + $0x10] sm:$0xff] %vm263_vm1, %v901_v16  ;;  %v904_v23 = vsel %vm840_vm11, %v808_v0, %v872_v11  ;;  %v810_v25 = vadd.f32 %v1491_v5, %v771_v20  ;;  %v1203_v31 = vpop.f32.mrf.mxu0  ;;  %v1227_v32 = vpop.f32.mrf.mxu1  ;;  %vm839_vm13 = vcmp.ge.f32.partialorder %v807_v18, 0.0  ;;  %v309_v45 = vld [vmem:[#allocation2 + $0x68] sm:$0xff]  ;;  %v324_v52 = vld [vmem:[#allocation2 + $0xe0] sm:$0xff] }
  0xfb   : > { %949 = vst.msk [vmem:[%s1504_s22 + $0x90] sm:$0xff] %vm263_vm1, %v917_v17  ;;  %v920_v24 = vsel %vm856_vm12, %v824_v1, %v888_v12  ;;  %v826_v26 = vadd.f32 %v1491_v5, %v787_v21  ;;  %936 = vst.msk [vmem:[%s1504_s22 + $0x28] sm:$0xff] %vm263_vm1, %v904_v23  ;;  %v871_v33 = vmul.f32 0.01, %v807_v18  ;;  %vm855_vm14 = vcmp.ge.f32.partialorder %v823_v19, 0.0  ;;  %v325_v50 = vld [vmem:[#allocation2 + $0xe8] sm:$0xff] }
  0xfc   : > { %952 = vst.msk [vmem:[%s1504_s22 + $0xa8] sm:$0xff] %vm263_vm1, %v920_v24  ;;  %v887_v34 = vmul.f32 0.01, %v823_v19  ;;  %vm842_vm15 = vcmp.ge.f32.partialorder %v810_v25, 0.0  ;;  %v874_v35 = vmul.f32 0.01, %v810_v25  ;;  %v597_v37 = vpop.f32.mrf.mxu0  ;;  %v677_v38 = vpop.f32.mrf.mxu1  ;;  %v704_v43 = vadd.f32 %v1518_v57, %v304_v13 }
  0xfd   : > { %vm858_vm0 = vcmp.ge.f32.partialorder %v826_v26, 0.0  ;;  %v890_v36 = vmul.f32 0.01, %v826_v26  ;;  %v903_v39 = vsel %vm839_vm13, %v807_v18, %v871_v33  ;;  %v770_v41 = vld [vmem:[#allocation2 + $0x30] sm:$0xff]  ;;  %v720_v44 = vadd.f32 %v1520_v58, %v320_v22  ;;  %v311_v61 = vld [vmem:[#allocation2 + $0x78] sm:$0xff] }
  0xfe   : > { %v919_v40 = vsel %vm855_vm14, %v823_v19, %v887_v34  ;;  %v786_v42 = vld [vmem:[#allocation2 + $0xb0] sm:$0xff]  ;;  %935 = vst.msk [vmem:[%s1504_s22 + $0x20] sm:$0xff] %vm263_vm1, %v903_v39  ;;  %v906_v46 = vsel %vm842_vm15, %v810_v25, %v874_v35  ;;  %v809_v48 = vadd.f32 %v1491_v5, %v770_v41  ;;  %v1206_v53 = vpop.f32.mrf.mxu0  ;;  %v1230_v54 = vpop.f32.mrf.mxu1  ;;  %737 = vst.msk [vmem:[#allocation2 + $0x40] sm:$0xff] %vm263_vm1, %v704_v43  ;;  %v327_v4 = vld [vmem:[#allocation2 + $0xf8] sm:$0xff] }
  0xff   : > { %951 = vst.msk [vmem:[%s1504_s22 + $0xa0] sm:$0xff] %vm263_vm1, %v919_v40  ;;  %v922_v47 = vsel %vm858_vm0, %v826_v26, %v890_v36  ;;  %v825_v49 = vadd.f32 %v1491_v5, %v786_v42  ;;  %938 = vst.msk [vmem:[%s1504_s22 + $0x38] sm:$0xff] %vm263_vm1, %v906_v46  ;;  %v707_v57 = vadd.f32 %v1536_v7, %v307_v27  ;;  %v310_v6 = vld [vmem:[#allocation2 + $0x70] sm:$0xff] }
 0x100   : > { %954 = vst.msk [vmem:[%s1504_s22 + $0xb8] sm:$0xff] %vm263_vm1, %v922_v47  ;;  %v773_v55 = vld [vmem:[#allocation2 + $0x48] sm:$0xff]  ;;  %753 = vst.msk [vmem:[#allocation2 + $0xc0] sm:$0xff] %vm263_vm1, %v720_v44  ;;  %v723_v58 = vadd.f32 %v1538_v8, %v323_v28  ;;  %v706_v59 = vadd.f32 %v587_v14, %v306_v29  ;;  %v722_v60 = vadd.f32 %v667_v15, %v322_v30  ;;  %vm841_vm2 = vcmp.ge.f32.partialorder %v809_v48, 0.0  ;;  %v607_v7 = vpop.f32.mrf.mxu0  ;;  %v326_v8 = vld [vmem:[#allocation2 + $0xf0] sm:$0xff]  ;;  %v687_v9 = vpop.f32.mrf.mxu1 }
 0x101   : > { %v789_v56 = vld [vmem:[#allocation2 + $0xc8] sm:$0xff]  ;;  %v873_v62 = vmul.f32 0.01, %v809_v48  ;;  %vm857_vm3 = vcmp.ge.f32.partialorder %v825_v49, 0.0  ;;  %v889_v63 = vmul.f32 0.01, %v825_v49  ;;  %v812_v0 = vadd.f32 %v1491_v5, %v773_v55 }
 0x102   : > { %v828_v1 = vadd.f32 %v1491_v5, %v789_v56  ;;  %740 = vst.msk [vmem:[#allocation2 + $0x58] sm:$0xff] %vm263_vm1, %v707_v57  ;;  %756 = vst.msk [vmem:[#allocation2 + $0xd8] sm:$0xff] %vm263_vm1, %v723_v58  ;;  %v709_v2 = vadd.f32 %v1203_v31, %v309_v45  ;;  %v725_v3 = vadd.f32 %v1227_v32, %v325_v50 }
 0x103   : > { %739 = vst.msk [vmem:[#allocation2 + $0x50] sm:$0xff] %vm263_vm1, %v706_v59  ;;  %755 = vst.msk [vmem:[#allocation2 + $0xd0] sm:$0xff] %vm263_vm1, %v722_v60  ;;  %v905_v10 = vsel %vm841_vm2, %v809_v48, %v873_v62  ;;  %v921_v11 = vsel %vm857_vm3, %v825_v49, %v889_v63  ;;  %v708_v12 = vadd.f32 %v597_v37, %v308_v51  ;;  %vm844_vm4 = vcmp.ge.f32.partialorder %v812_v0, 0.0 }
 0x104   : > { %v724_v13 = vadd.f32 %v677_v38, %v324_v52  ;;  %937 = vst.msk [vmem:[%s1504_s22 + $0x30] sm:$0xff] %vm263_vm1, %v905_v10  ;;  %953 = vst.msk [vmem:[%s1504_s22 + $0xb0] sm:$0xff] %vm263_vm1, %v921_v11  ;;  %v876_v14 = vmul.f32 0.01, %v812_v0  ;;  %vm860_vm5 = vcmp.ge.f32.partialorder %v828_v1, 0.0  ;;  %v711_v16 = vadd.f32 %v1206_v53, %v311_v61 }
 0x105   : > { %v892_v15 = vmul.f32 0.01, %v828_v1  ;;  %742 = vst.msk [vmem:[#allocation2 + $0x68] sm:$0xff] %vm263_vm1, %v709_v2  ;;  %758 = vst.msk [vmem:[#allocation2 + $0xe8] sm:$0xff] %vm263_vm1, %v725_v3  ;;  %v727_v17 = vadd.f32 %v1230_v54, %v327_v4  ;;  %v710_v18 = vadd.f32 %v607_v7, %v310_v6  ;;  %v726_v19 = vadd.f32 %v687_v9, %v326_v8  ;;  %v772_v22 = vld [vmem:[#allocation2 + $0x40] sm:$0xff] }
 0x106   : > { %741 = vst.msk [vmem:[#allocation2 + $0x60] sm:$0xff] %vm263_vm1, %v708_v12  ;;  %757 = vst.msk [vmem:[#allocation2 + $0xe0] sm:$0xff] %vm263_vm1, %v724_v13  ;;  %v908_v20 = vsel %vm844_vm4, %v812_v0, %v876_v14  ;;  %v811_v24 = vadd.f32 %v1491_v5, %v772_v22 }
 0x107   : > { %v924_v21 = vsel %vm860_vm5, %v828_v1, %v892_v15  ;;  %940 = vst.msk [vmem:[%s1504_s22 + $0x48] sm:$0xff] %vm263_vm1, %v908_v20  ;;  %v788_v23 = vld [vmem:[#allocation2 + $0xc0] sm:$0xff]  ;;  %744 = vst.msk [vmem:[#allocation2 + $0x78] sm:$0xff] %vm263_vm1, %v711_v16 }
 0x108   : > { %956 = vst.msk [vmem:[%s1504_s22 + $0xc8] sm:$0xff] %vm263_vm1, %v924_v21  ;;  %760 = vst.msk [vmem:[#allocation2 + $0xf8] sm:$0xff] %vm263_vm1, %v727_v17  ;;  %v827_v25 = vadd.f32 %v1491_v5, %v788_v23  ;;  %vm843_vm6 = vcmp.ge.f32.partialorder %v811_v24, 0.0  ;;  %v875_v29 = vmul.f32 0.01, %v811_v24 }
 0x109   : > { %743 = vst.msk [vmem:[#allocation2 + $0x70] sm:$0xff] %vm263_vm1, %v710_v18  ;;  %759 = vst.msk [vmem:[#allocation2 + $0xf0] sm:$0xff] %vm263_vm1, %v726_v19  ;;  %v775_v26 = vld [vmem:[#allocation2 + $0x58] sm:$0xff] }
 0x10a   : > { %v791_v27 = vld [vmem:[#allocation2 + $0xd8] sm:$0xff]  ;;  %v774_v28 = vld [vmem:[#allocation2 + $0x50] sm:$0xff]  ;;  %vm859_vm7 = vcmp.ge.f32.partialorder %v827_v25, 0.0  ;;  %v891_v30 = vmul.f32 0.01, %v827_v25  ;;  %v814_v31 = vadd.f32 %v1491_v5, %v775_v26  ;;  %v907_v36 = vsel %vm843_vm6, %v811_v24, %v875_v29 }
 0x10b   : > { %v830_v32 = vadd.f32 %v1491_v5, %v791_v27  ;;  %v813_v33 = vadd.f32 %v1491_v5, %v774_v28  ;;  %v790_v34 = vld [vmem:[#allocation2 + $0xd0] sm:$0xff]  ;;  %939 = vst.msk [vmem:[%s1504_s22 + $0x40] sm:$0xff] %vm263_vm1, %v907_v36 }
 0x10c   : > { %v777_v35 = vld [vmem:[#allocation2 + $0x68] sm:$0xff]  ;;  %v923_v37 = vsel %vm859_vm7, %v827_v25, %v891_v30  ;;  %v829_v38 = vadd.f32 %v1491_v5, %v790_v34  ;;  %vm846_vm8 = vcmp.ge.f32.partialorder %v814_v31, 0.0  ;;  %v878_v43 = vmul.f32 0.01, %v814_v31 }
 0x10d   : > { %v816_v39 = vadd.f32 %v1491_v5, %v777_v35  ;;  %v793_v40 = vld [vmem:[#allocation2 + $0xe8] sm:$0xff]  ;;  %v776_v41 = vld [vmem:[#allocation2 + $0x60] sm:$0xff]  ;;  %955 = vst.msk [vmem:[%s1504_s22 + $0xc0] sm:$0xff] %vm263_vm1, %v923_v37  ;;  %vm862_vm9 = vcmp.ge.f32.partialorder %v830_v32, 0.0  ;;  %v894_v44 = vmul.f32 0.01, %v830_v32 }
 0x10e   : > { %v792_v42 = vld [vmem:[#allocation2 + $0xe0] sm:$0xff]  ;;  %vm845_vm10 = vcmp.ge.f32.partialorder %v813_v33, 0.0  ;;  %v877_v45 = vmul.f32 0.01, %v813_v33  ;;  %vm861_vm11 = vcmp.ge.f32.partialorder %v829_v38, 0.0  ;;  %v910_v47 = vsel %vm846_vm8, %v814_v31, %v878_v43  ;;  %v779_v50 = vld [vmem:[#allocation2 + $0x78] sm:$0xff] }
 0x10f   : > { %v893_v46 = vmul.f32 0.01, %v829_v38  ;;  %v926_v48 = vsel %vm862_vm9, %v830_v32, %v894_v44  ;;  %vm848_vm12 = vcmp.ge.f32.partialorder %v816_v39, 0.0  ;;  %v880_v49 = vmul.f32 0.01, %v816_v39  ;;  %v795_v51 = vld [vmem:[#allocation2 + $0xf8] sm:$0xff] }
 0x110   : > { %942 = vst.msk [vmem:[%s1504_s22 + $0x58] sm:$0xff] %vm263_vm1, %v910_v47  ;;  %958 = vst.msk [vmem:[%s1504_s22 + $0xd8] sm:$0xff] %vm263_vm1, %v926_v48  ;;  %v909_v52 = vsel %vm845_vm10, %v813_v33, %v877_v45  ;;  %v832_v54 = vadd.f32 %v1491_v5, %v793_v40  ;;  %v815_v55 = vadd.f32 %v1491_v5, %v776_v41  ;;  %v778_v60 = vld [vmem:[#allocation2 + $0x70] sm:$0xff] }
 0x111   : > { %v925_v53 = vsel %vm861_vm11, %v829_v38, %v893_v46  ;;  %941 = vst.msk [vmem:[%s1504_s22 + $0x50] sm:$0xff] %vm263_vm1, %v909_v52  ;;  %v912_v56 = vsel %vm848_vm12, %v816_v39, %v880_v49  ;;  %v831_v57 = vadd.f32 %v1491_v5, %v792_v42  ;;  %v818_v58 = vadd.f32 %v1491_v5, %v779_v50  ;;  %v794_v61 = vld [vmem:[#allocation2 + $0xf0] sm:$0xff] }
 0x112   : > { %957 = vst.msk [vmem:[%s1504_s22 + $0xd0] sm:$0xff] %vm263_vm1, %v925_v53  ;;  %v834_v59 = vadd.f32 %v1491_v5, %v795_v51  ;;  %944 = vst.msk [vmem:[%s1504_s22 + $0x68] sm:$0xff] %vm263_vm1, %v912_v56  ;;  %vm864_vm13 = vcmp.ge.f32.partialorder %v832_v54, 0.0  ;;  %v896_v62 = vmul.f32 0.01, %v832_v54  ;;  %vm847_vm14 = vcmp.ge.f32.partialorder %v815_v55, 0.0 }
 0x113   : > { %v879_v63 = vmul.f32 0.01, %v815_v55  ;;  %vm863_vm15 = vcmp.ge.f32.partialorder %v831_v57, 0.0  ;;  %v895_v0 = vmul.f32 0.01, %v831_v57  ;;  %vm850_vm0 = vcmp.ge.f32.partialorder %v818_v58, 0.0 }
 0x114   : > { %v882_v1 = vmul.f32 0.01, %v818_v58  ;;  %v928_v2 = vsel %vm864_vm13, %v832_v54, %v896_v62  ;;  %vm866_vm2 = vcmp.ge.f32.partialorder %v834_v59, 0.0  ;;  %v898_v4 = vmul.f32 0.01, %v834_v59 }
 0x115   : > { %v911_v3 = vsel %vm847_vm14, %v815_v55, %v879_v63  ;;  %960 = vst.msk [vmem:[%s1504_s22 + $0xe8] sm:$0xff] %vm263_vm1, %v928_v2  ;;  %v927_v6 = vsel %vm863_vm15, %v831_v57, %v895_v0  ;;  %v817_v8 = vadd.f32 %v1491_v5, %v778_v60  ;;  %v833_v9 = vadd.f32 %v1491_v5, %v794_v61 }
 0x116   : > { %943 = vst.msk [vmem:[%s1504_s22 + $0x60] sm:$0xff] %vm263_vm1, %v911_v3  ;;  %v914_v7 = vsel %vm850_vm0, %v818_v58, %v882_v1  ;;  %959 = vst.msk [vmem:[%s1504_s22 + $0xe0] sm:$0xff] %vm263_vm1, %v927_v6  ;;  %v930_v10 = vsel %vm866_vm2, %v834_v59, %v898_v4 }
 0x117   : > { %946 = vst.msk [vmem:[%s1504_s22 + $0x78] sm:$0xff] %vm263_vm1, %v914_v7  ;;  %962 = vst.msk [vmem:[%s1504_s22 + $0xf8] sm:$0xff] %vm263_vm1, %v930_v10  ;;  %vm849_vm3 = vcmp.ge.f32.partialorder %v817_v8, 0.0  ;;  %v881_v11 = vmul.f32 0.01, %v817_v8  ;;  %vm865_vm4 = vcmp.ge.f32.partialorder %v833_v9, 0.0 }
 0x118   : > { %v897_v12 = vmul.f32 0.01, %v833_v9 }
 0x119   : > { %v913_v13 = vsel %vm849_vm3, %v817_v8, %v881_v11 }
 0x11a   : > { %v929_v14 = vsel %vm865_vm4, %v833_v9, %v897_v12  ;;  %945 = vst.msk [vmem:[%s1504_s22 + $0x70] sm:$0xff] %vm263_vm1, %v913_v13 }
 0x11b   : > { %961 = vst.msk [vmem:[%s1504_s22 + $0xf0] sm:$0xff] %vm263_vm1, %v929_v14 }
 0x11c PF: > { %s13_s14 = sadd.s32 1, %s1298_s14   ;;  %s1651_s12 = smov %s1294_s13 }
 0x11d   : > { %p10_p5 = scmp.ge.s32.totalorder %s13_s14, 10   ;;  %s1652_s13 = smov %s1654_s15 }
 0x11f   :  { %12 = sbr.rel (!%p10_p5) target bundleno = 2 (0x2), region = 76 }

</bundles_post_ra>
